<compile_context>
chip_gen: v6e
topology: v6e:2x2x1
jax: 0.10.0
libtpu: 0.0.40
codegen_flags: <defaults>
</compile_context>

<pallas_src>
import functools
import math

import jax
import jax.numpy as jnp
from jax import lax
from jax.experimental import pallas as pl
from jax.experimental.pallas import tpu as pltpu

_NEG_INF = -1e30  # large finite negative: avoids exp(-inf - -inf) = NaN on masked rows


def _pick_tile(dim, target, multiple):
    """Largest tile <= target that divides dim and is a multiple of `multiple`.
    Falls back to the full dim (always a legal block)."""
    if dim <= target:
        return dim
    t = (min(target, dim) // multiple) * multiple
    while t >= multiple:
        if dim % t == 0:
            return t
        t -= multiple
    return dim


# ----------------------------------------------------------------------------
# Kernel 1: tiled linear projection  y = x @ W + b   (q/k/v projections)
#   grid = (rows/TM, E_out/TN, E_in/TK), f32 accumulator scratch, K axis arbitrary.
# ----------------------------------------------------------------------------
def _linear_kernel(x_ref, w_ref, b_ref, o_ref, acc_ref):
    k = pl.program_id(2)

    @pl.when(k == 0)
    def _():
        acc_ref[...] = jnp.zeros_like(acc_ref)

    # Native-dtype MXU operands, f32 accumulation.
    acc_ref[...] += jnp.dot(x_ref[...], w_ref[...],
                            preferred_element_type=jnp.float32)

    @pl.when(k == pl.num_programs(2) - 1)
    def _():
        o_ref[...] = (acc_ref[...] + b_ref[...].astype(jnp.float32)).astype(o_ref.dtype)


def pallas_linear(x, w, b, *, tm=256, tn=256, tk=512):
    B, S, E_in = x.shape
    E_out = w.shape[1]
    rows = B * S
    x2 = x.reshape(rows, E_in)          # free reshape (no transpose)
    tm = _pick_tile(rows, tm, 8)
    tn = _pick_tile(E_out, tn, 128)
    tk = _pick_tile(E_in, tk, 128)
    out = pl.pallas_call(
        _linear_kernel,
        out_shape=jax.ShapeDtypeStruct((rows, E_out), x.dtype),
        grid=(rows // tm, E_out // tn, E_in // tk),
        in_specs=[
            pl.BlockSpec((tm, tk), lambda i, j, k: (i, k)),
            pl.BlockSpec((tk, tn), lambda i, j, k: (k, j)),
            pl.BlockSpec((1, tn), lambda i, j, k: (0, j)),
        ],
        out_specs=pl.BlockSpec((tm, tn), lambda i, j, k: (i, j)),
        scratch_shapes=[pltpu.VMEM((tm, tn), jnp.float32)],
        compiler_params=pltpu.CompilerParams(
            dimension_semantics=("parallel", "parallel", "arbitrary")),
    )(x2, w, b)
    return out.reshape(B, S, E_out)


# ----------------------------------------------------------------------------
# Kernel 2: flash-style GQA attention (online softmax), one (b, head, q-tile) stream
#   over KV tiles.  KV-head sharing via index_map (query head h reads kv head h % Hk,
#   matching the unsqueeze/expand/reshape grouping of the reference code).
# ----------------------------------------------------------------------------
def _flash_attn_kernel(q_ref, k_ref, v_ref, o_ref, m_ref, l_ref, acc_ref,
                       *, inv_scale, is_causal, tq, tkv):
    qi = pl.program_id(2)
    ki = pl.program_id(3)
    n_kv = pl.num_programs(3)

    @pl.when(ki == 0)
    def _():
        m_ref[...] = jnp.full_like(m_ref, _NEG_INF)
        l_ref[...] = jnp.zeros_like(l_ref)
        acc_ref[...] = jnp.zeros_like(acc_ref)

    def compute(apply_mask):
        # Scale q before the matmul (same ordering as the reference `query / scale`);
        # this is a (TQ, D) multiply instead of a (TQ, TKV) one on the score tile.
        q = q_ref[0, 0] * jnp.asarray(inv_scale, q_ref.dtype)     # (TQ, D), native dtype
        k = k_ref[0, 0]                                           # (TKV, D)
        # s = q @ k^T on the MXU (contraction over D), f32 accumulation.
        s = lax.dot_general(q, k, (((1,), (1,)), ((), ())),
                            preferred_element_type=jnp.float32)   # (TQ, TKV) f32
        if apply_mask:
            q_idx = qi * tq + lax.broadcasted_iota(jnp.int32, s.shape, 0)
            k_idx = ki * tkv + lax.broadcasted_iota(jnp.int32, s.shape, 1)
            s = jnp.where(k_idx <= q_idx, s, _NEG_INF)
        m_prev = m_ref[...]                                       # (TQ, 1) f32
        m_new = jnp.maximum(m_prev, jnp.max(s, axis=-1, keepdims=True))
        alpha = jnp.exp(m_prev - m_new)
        p = jnp.exp(s - m_new)                                    # (TQ, TKV) f32 (EUP)
        l_ref[...] = alpha * l_ref[...] + jnp.sum(p, axis=-1, keepdims=True)
        acc_ref[...] = alpha * acc_ref[...] + jnp.dot(
            p.astype(v_ref.dtype), v_ref[0, 0], preferred_element_type=jnp.float32)
        m_ref[...] = m_new

    if is_causal:
        q_lo = qi * tq
        q_hi = qi * tq + (tq - 1)
        k_lo = ki * tkv
        k_hi = ki * tkv + (tkv - 1)
        # Three mutually exclusive cases:
        #   k_lo > q_hi            -> tile entirely above the diagonal: skip entirely
        #   k_hi <= q_lo           -> tile entirely visible: unmasked fast path
        #   otherwise              -> straddles the diagonal: masked path
        # Tile ki == 0 is never fully masked, so init/finalize stay correct.
        on_diagonal = jnp.logical_and(k_lo <= q_hi, k_hi > q_lo)
        fully_visible = k_hi <= q_lo
        pl.when(on_diagonal)(lambda: compute(True))
        pl.when(fully_visible)(lambda: compute(False))
    else:
        compute(False)

    @pl.when(ki == n_kv - 1)
    def _():
        out = acc_ref[...] * pl.reciprocal(l_ref[...], approx=True)
        o_ref[0, 0] = out.astype(o_ref.dtype)


def pallas_gqa_attention(q, k, v, *, is_causal=False, tq=256, tkv=512):
    B, Hq, Sq, Dq = q.shape
    _, Hk, Skv, Dkv = k.shape
    assert Dq == Dkv, "reference einsum requires matching head dims"
    tq = _pick_tile(Sq, tq, 8)
    tkv = _pick_tile(Skv, tkv, 128)
    inv_scale = 1.0 / (float(Dq) ** 0.5)
    kernel = functools.partial(_flash_attn_kernel, inv_scale=inv_scale,
                               is_causal=is_causal, tq=tq, tkv=tkv)
    # TODO(synk): when Hq != Hk, K/V tiles could be shared across the G = Hq/Hk query
    # heads that map to the same kv head by packing G heads per program; the %Hk
    # mapping makes those heads non-contiguous, so it is left as a follow-up.
    # TODO(synk): for head_dim < 128 the output store is lane-sparse; packing multiple
    # heads per program would make it lane-dense, at the cost of a layout shuffle.
    return pl.pallas_call(
        kernel,
        out_shape=jax.ShapeDtypeStruct((B, Hq, Sq, Dkv), q.dtype),
        grid=(B, Hq, Sq // tq, Skv // tkv),
        in_specs=[
            pl.BlockSpec((1, 1, tq, Dq), lambda b, h, qi, ki: (b, h, qi, 0)),
            pl.BlockSpec((1, 1, tkv, Dkv), lambda b, h, qi, ki: (b, h % Hk, ki, 0)),
            pl.BlockSpec((1, 1, tkv, Dkv), lambda b, h, qi, ki: (b, h % Hk, ki, 0)),
        ],
        out_specs=pl.BlockSpec((1, 1, tq, Dkv), lambda b, h, qi, ki: (b, h, qi, 0)),
        scratch_shapes=[
            pltpu.VMEM((tq, 1), jnp.float32),      # running max m
            pltpu.VMEM((tq, 1), jnp.float32),      # running denom l
            pltpu.VMEM((tq, Dkv), jnp.float32),    # output accumulator
        ],
        compiler_params=pltpu.CompilerParams(
            dimension_semantics=("parallel", "parallel", "parallel", "arbitrary")),
    )(q, k, v)


# ----------------------------------------------------------------------------
# Kernel 3: fused LayerNorm(E) + output projection, tiled over (rows, N).
#   LN needs the whole E row, so K is kept whole; the normalized row tile is computed
#   once (at j == 0) into a VMEM scratch and reused for every N tile.
# ----------------------------------------------------------------------------
def _ln_proj_kernel(x_ref, g_ref, beta_ref, w_ref, b_ref, o_ref, xn_ref,
                    *, eps, use_ln):
    @pl.when(pl.program_id(1) == 0)
    def _():
        x = x_ref[...].astype(jnp.float32)                       # (TM, E)
        if use_ln:
            mu = jnp.mean(x, axis=-1, keepdims=True)
            var = jnp.mean(jnp.square(x - mu), axis=-1, keepdims=True)  # biased, like torch LN
            x = (x - mu) * lax.rsqrt(var + eps)
            x = x * g_ref[...].astype(jnp.float32) + beta_ref[...].astype(jnp.float32)
        xn_ref[...] = x.astype(xn_ref.dtype)

    y = jnp.dot(xn_ref[...], w_ref[...], preferred_element_type=jnp.float32)
    o_ref[...] = (y + b_ref[...].astype(jnp.float32)).astype(o_ref.dtype)


def pallas_ln_out_proj(x, gamma, beta, w, b, *, eps, use_ln, tm=128, tn=256):
    B, S, E = x.shape
    E_out = w.shape[1]
    rows = B * S
    x2 = x.reshape(rows, E)
    tm = _pick_tile(rows, tm, 8)
    tn = _pick_tile(E_out, tn, 128)
    kernel = functools.partial(_ln_proj_kernel, eps=eps, use_ln=use_ln)
    out = pl.pallas_call(
        kernel,
        out_shape=jax.ShapeDtypeStruct((rows, E_out), x.dtype),
        grid=(rows // tm, E_out // tn),
        in_specs=[
            pl.BlockSpec((tm, E), lambda i, j: (i, 0)),
            pl.BlockSpec((1, E), lambda i, j: (0, 0)),
            pl.BlockSpec((1, E), lambda i, j: (0, 0)),
            pl.BlockSpec((E, tn), lambda i, j: (0, j)),
            pl.BlockSpec((1, tn), lambda i, j: (0, j)),
        ],
        out_specs=pl.BlockSpec((tm, tn), lambda i, j: (i, j)),
        scratch_shapes=[pltpu.VMEM((tm, E), x.dtype)],
        # j kept "arbitrary" so the j==0 scratch init is always executed per row tile.
        compiler_params=pltpu.CompilerParams(
            dimension_semantics=("parallel", "arbitrary")),
    )(x2, gamma, beta, w, b)
    return out.reshape(B, S, E_out)


# ----------------------------------------------------------------------------
# Module wrapper (parameter container + forward glue)
# ----------------------------------------------------------------------------
class MultiheadGQAPallas:
    def __init__(self, embed_dim, num_query_heads, num_kv_heads, *, layer_norm=True,
                 layer_norm_eps=1e-5, key=None, dtype=jnp.float32):
        if embed_dim % num_query_heads != 0:
            raise ValueError("embed_dim must be divisible by num_query_heads")
        if embed_dim % num_kv_heads != 0:
            raise ValueError("embed_dim must be divisible by num_kv_heads")
        self.embed_dim = embed_dim
        self.num_query_heads = num_query_heads
        self.num_kv_heads = num_kv_heads
        self.head_dim_q = embed_dim // num_query_heads
        self.head_dim_kv = embed_dim // num_kv_heads
        self.layer_norm = layer_norm
        self.layer_norm_eps = layer_norm_eps

        keys = jax.random.split(key, 10)
        init_w = lambda k: 0.02 * jax.random.normal(k, (embed_dim, embed_dim), dtype)
        init_b = lambda k: 0.01 * jax.random.normal(k, (1, embed_dim), dtype)
        # weights already transposed to (in, out)
        self.wq, self.wk, self.wv, self.wo = (init_w(k) for k in keys[:4])
        self.bq, self.bk, self.bv, self.bo = (init_b(k) for k in keys[4:8])
        self.ln_gamma = 1.0 + 0.05 * jax.random.normal(keys[8], (1, embed_dim), dtype)
        self.ln_beta = 0.05 * jax.random.normal(keys[9], (1, embed_dim), dtype)

    def __call__(self, query, key, value, *, is_causal=False):
        B, Sq, _ = query.shape
        _, Skv, _ = key.shape

        q = pallas_linear(query, self.wq, self.bq)
        k = pallas_linear(key, self.wk, self.bk)
        v = pallas_linear(value, self.wv, self.bv)

        # (B, S, H, D) -> (B, H, S, D).  TODO(synk): these XLA transposes could be
        # folded into the kernels, but blocks with a <128-lane head dim violate the
        # (8,128) block constraint, so the standard per-head layout is kept.
        q = q.reshape(B, Sq, self.num_query_heads, self.head_dim_q).transpose(0, 2, 1, 3)
        k = k.reshape(B, Skv, self.num_kv_heads, self.head_dim_kv).transpose(0, 2, 1, 3)
        v = v.reshape(B, Skv, self.num_kv_heads, self.head_dim_kv).transpose(0, 2, 1, 3)

        if self.num_query_heads != self.num_kv_heads:
            # Faithful to the reference expand/reshape: requires gcd(hq,hk)*hk == hq
            # and head_dim_q == head_dim_kv (otherwise the torch code itself errors).
            g = math.gcd(self.num_query_heads, self.num_kv_heads)
            assert g * self.num_kv_heads == self.num_query_heads
            assert self.head_dim_q == self.head_dim_kv

        out = pallas_gqa_attention(q, k, v, is_causal=is_causal)        # (B, Hq, Sq, D)
        out = out.transpose(0, 2, 1, 3).reshape(B, Sq, self.embed_dim)  # (B, Sq, E)

        out = pallas_ln_out_proj(out, self.ln_gamma, self.ln_beta, self.wo, self.bo,
                                 eps=self.layer_norm_eps, use_ln=self.layer_norm)
        # TODO(synk): need_weights / average_attn_weights (attention-probability output)
        # is not materialized by the flash kernel; default call uses need_weights=False.
        return out, None


# ----------------------------------------------------------------------------
# Pure-JAX references for correctness checks.
# ----------------------------------------------------------------------------
def reference_forward(m, query, key, value, *, is_causal=False):
    B, Sq, E = query.shape
    _, Skv, _ = key.shape
    q = query @ m.wq + m.bq
    k = key @ m.wk + m.bk
    v = value @ m.wv + m.bv
    q = q.reshape(B, Sq, m.num_query_heads, m.head_dim_q).transpose(0, 2, 1, 3)
    k = k.reshape(B, Skv, m.num_kv_heads, m.head_dim_kv).transpose(0, 2, 1, 3)
    v = v.reshape(B, Skv, m.num_kv_heads, m.head_dim_kv).transpose(0, 2, 1, 3)
    if m.num_query_heads != m.num_kv_heads:
        g = m.num_query_heads // m.num_kv_heads
        k = jnp.tile(k, (1, g, 1, 1))
        v = jnp.tile(v, (1, g, 1, 1))
    scale = m.head_dim_q ** 0.5
    s = jnp.einsum("bhqd,bhkd->bhqk", q / scale, k)
    if is_causal:
        mask = jnp.tril(jnp.ones((Sq, Skv), bool))
        s = jnp.where(mask, s, -jnp.inf)
    p = jax.nn.softmax(s, axis=-1)
    o = jnp.einsum("bhqk,bhkd->bhqd", p, v)
    o = o.transpose(0, 2, 1, 3).reshape(B, Sq, E)
    if m.layer_norm:
        mu = jnp.mean(o, axis=-1, keepdims=True)
        var = jnp.mean((o - mu) ** 2, axis=-1, keepdims=True)
        o = (o - mu) / jnp.sqrt(var + m.layer_norm_eps) * m.ln_gamma + m.ln_beta
    return o @ m.wo + m.bo


def reference_attention(q, k, v, *, is_causal=False):
    scale = q.shape[-1] ** 0.5
    s = jnp.einsum("bhqd,bhkd->bhqk", q / scale, k)
    if is_causal:
        mask = jnp.tril(jnp.ones((q.shape[2], k.shape[2]), bool))
        s = jnp.where(mask, s, -jnp.inf)
    p = jax.nn.softmax(s, axis=-1)
    return jnp.einsum("bhqk,bhkd->bhqd", p, v)


if __name__ == "__main__":
    B, S, E = 2, 8, 32
    Hq, Hk = 4, 4  # (hq != hk makes the reference PyTorch forward itself error: head-dim mismatch)

    root = jax.random.PRNGKey(0)
    k1, k2, k3, kp, ka = jax.random.split(root, 5)
    q_in = jax.random.normal(k1, (B, S, E), jnp.float32)
    k_in = jax.random.normal(k2, (B, S, E), jnp.float32)
    v_in = jax.random.normal(k3, (B, S, E), jnp.float32)

    model = MultiheadGQAPallas(E, Hq, Hk, layer_norm=True, key=kp)

    # Non-causal path
    out, attn_weights = model(q_in, k_in, v_in, is_causal=False)
    out = jax.block_until_ready(out)
    ref = reference_forward(model, q_in, k_in, v_in, is_causal=False)
    assert out.shape == (B, S, E)
    assert jnp.max(jnp.abs(out - ref)) < 2e-2, "non-causal mismatch vs pure-JAX reference"

    # Causal path (exercises masking)
    out_c, _ = model(q_in, k_in, v_in, is_causal=True)
    out_c = jax.block_until_ready(out_c)
    ref_c = reference_forward(model, q_in, k_in, v_in, is_causal=True)
    assert jnp.max(jnp.abs(out_c - ref_c)) < 2e-2, "causal mismatch vs pure-JAX reference"

    # Multi-tile causal attention test: exercises all three causal tile classes
    # (fully-masked skip, diagonal masked path, fully-visible unmasked fast path).
    ka1, ka2, ka3 = jax.random.split(ka, 3)
    qa = jax.random.normal(ka1, (1, 2, 256, 64), jnp.float32)
    kb = jax.random.normal(ka2, (1, 2, 256, 64), jnp.float32)
    vb = jax.random.normal(ka3, (1, 2, 256, 64), jnp.float32)
    oa = pallas_gqa_attention(qa, kb, vb, is_causal=True, tq=64, tkv=128)
    oa = jax.block_until_ready(oa)
    ra = reference_attention(qa, kb, vb, is_causal=True)
    assert jnp.max(jnp.abs(oa - ra)) < 2e-2, "multi-tile causal attention mismatch"

    print("KERNEL_OK")
</pallas_src>

<mosaic_0001>
module attributes {stable_mosaic.version = 11 : i64} {
  func.func @_linear_kernel(%arg0: i32, %arg1: i32, %arg2: i32, %arg3: memref<16x32xf32, #tpu.memory_space<vmem>>, %arg4: memref<32x32xf32, #tpu.memory_space<vmem>>, %arg5: memref<1x32xf32, #tpu.memory_space<vmem>>, %arg6: memref<16x32xf32, #tpu.memory_space<vmem>>, %arg7: memref<16x32xf32, #tpu.memory_space<vmem>>) attributes {dimension_semantics = [#tpu.dimension_semantics<parallel>, #tpu.dimension_semantics<parallel>, #tpu.dimension_semantics<arbitrary>], iteration_bounds = array<i64: 1, 1, 1>, scalar_prefetch = 0 : i64, scratch_operands = 1 : i64, tpu.core_type = #tpu.core_type<tc>, window_params = [{transform_indices = @transform_0, window_bounds = array<i64: 16, 32>}, {transform_indices = @transform_1, window_bounds = array<i64: 32, 32>}, {transform_indices = @transform_2, window_bounds = array<i64: 1, 32>}, {transform_indices = @transform_3, window_bounds = array<i64: 16, 32>}]} {
    %c0_i32 = arith.constant 0 : i32
    %0 = arith.cmpi eq, %arg2, %c0_i32 : i32
    %1 = arith.extui %0 : i1 to i32
    %c0_i32_0 = arith.constant 0 : i32
    %2 = arith.cmpi ne, %1, %c0_i32_0 : i32
    scf.if %2 {
      %cst_10 = arith.constant 0.000000e+00 : f32
      %12 = vector.broadcast %cst_10 : f32 to vector<16x32xf32>
      %c0_11 = arith.constant 0 : index
      %c0_12 = arith.constant 0 : index
      %13 = vector.load %arg7[%c0_11, %c0_12] : memref<16x32xf32, #tpu.memory_space<vmem>>, vector<16x32xf32>
      tpu.vector_store %arg7[%c0_11, %c0_12], %12 {strides = array<i32>} : memref<16x32xf32, #tpu.memory_space<vmem>>, vector<16x32xf32>,
    } else {
    }
    %c0 = arith.constant 0 : index
    %c0_1 = arith.constant 0 : index
    %3 = vector.load %arg7[%c0, %c0_1] : memref<16x32xf32, #tpu.memory_space<vmem>>, vector<16x32xf32>
    %c0_2 = arith.constant 0 : index
    %c0_3 = arith.constant 0 : index
    %4 = vector.load %arg3[%c0_2, %c0_3] : memref<16x32xf32, #tpu.memory_space<vmem>>, vector<16x32xf32>
    %c0_4 = arith.constant 0 : index
    %c0_5 = arith.constant 0 : index
    %5 = vector.load %arg4[%c0_4, %c0_5] : memref<32x32xf32, #tpu.memory_space<vmem>>, vector<32x32xf32>
    %cst = arith.constant dense<0.000000e+00> : vector<16x32xf32>
    %6 = tpu.matmul %4, %5, %cst {dimension_numbers = #tpu.dot_dimension_numbers<[1], [0], [0], [1], [0, 0, 1, 1], [], []>} : vector<16x32xf32>, vector<32x32xf32>, vector<16x32xf32> -> vector<16x32xf32>
    %7 = arith.addf %3, %6 : vector<16x32xf32>
    %c0_6 = arith.constant 0 : index
    %c0_7 = arith.constant 0 : index
    %8 = vector.load %arg7[%c0_6, %c0_7] : memref<16x32xf32, #tpu.memory_space<vmem>>, vector<16x32xf32>
    tpu.vector_store %arg7[%c0_6, %c0_7], %7 {strides = array<i32>} : memref<16x32xf32, #tpu.memory_space<vmem>>, vector<16x32xf32>,
    %c0_i32_8 = arith.constant 0 : i32
    %9 = arith.cmpi eq, %arg2, %c0_i32_8 : i32
    %10 = arith.extui %9 : i1 to i32
    %c0_i32_9 = arith.constant 0 : i32
    %11 = arith.cmpi ne, %10, %c0_i32_9 : i32
    scf.if %11 {
      %c0_10 = arith.constant 0 : index
      %c0_11 = arith.constant 0 : index
      %12 = vector.load %arg7[%c0_10, %c0_11] : memref<16x32xf32, #tpu.memory_space<vmem>>, vector<16x32xf32>
      %c0_12 = arith.constant 0 : index
      %c0_13 = arith.constant 0 : index
      %13 = vector.load %arg5[%c0_12, %c0_13] : memref<1x32xf32, #tpu.memory_space<vmem>>, vector<1x32xf32>
      %14 = vector.broadcast %13 : vector<1x32xf32> to vector<16x32xf32>
      %15 = arith.addf %12, %14 : vector<16x32xf32>
      %c0_14 = arith.constant 0 : index
      %c0_15 = arith.constant 0 : index
      %16 = vector.load %arg6[%c0_14, %c0_15] : memref<16x32xf32, #tpu.memory_space<vmem>>, vector<16x32xf32>
      tpu.vector_store %arg6[%c0_14, %c0_15], %15 {strides = array<i32>} : memref<16x32xf32, #tpu.memory_space<vmem>>, vector<16x32xf32>,
    } else {
    }
    return
  }
  func.func @transform_0(%arg0: i32, %arg1: i32, %arg2: i32) -> (i32, i32) {
    %c0_i32 = arith.constant 0 : i32
    return %arg0, %arg2 : i32, i32
  }
  func.func @transform_1(%arg0: i32, %arg1: i32, %arg2: i32) -> (i32, i32) {
    %c0_i32 = arith.constant 0 : i32
    return %arg2, %arg1 : i32, i32
  }
  func.func @transform_2(%arg0: i32, %arg1: i32, %arg2: i32) -> (i32, i32) {
    %c0_i32 = arith.constant 0 : i32
    %c0_i32_0 = arith.constant 0 : i32
    return %c0_i32, %arg1 : i32, i32
  }
  func.func @transform_3(%arg0: i32, %arg1: i32, %arg2: i32) -> (i32, i32) {
    %c0_i32 = arith.constant 0 : i32
    return %arg0, %arg1 : i32, i32
  }
}

</mosaic_0001>

<bundles_post_ra>
// kernel: tpu_custom_call.1
= control target key start
LH: loop header
LB: loop body
LE: loop exit
PB: predicated region body
PF: predicated region fallthrough
CT: control target
= control target key end

     0   :  { %8 = vsyncpa [#allocation4], 0  ;;  %s325_s0 = inlined_call_operand.hbm [shape: f32[16,32], index: 0, kind: input, shape index: {}]   ;;  %s326_s1 = inlined_call_operand.hbm [shape: f32[32,32], index: 1, kind: input, shape index: {}]   ;;  %s327_s2 = inlined_call_operand.vmem [shape: f32[1,32], index: 2, kind: input, shape index: {}]   ;;  %s328_s3 = inlined_call_operand.hbm [shape: f32[16,32], index: 3, kind: output, shape index: {}]  }
   0x1   :  { %9 = vsyncpa [#allocation7], 0 }
   0x2   :  { %10 = vsyncpa [#allocation5], 0  ;;  %s270_s12 = smov [#allocation3]  }
   0x3   :  { %s16_s13 = sshll.u32 %s270_s12, 4  ;;  %s17_s13 = int_to_ptr.vmem [resolvable:$true] %s16_s13 }
   0x4   :  { %s212_s14 = scalar_lea.vmem %s17_s13, 256  ;;  %p217_p1 = scmp.lt.s32.totalorder %s17_s13, %s17_s13 }
   0x5   :  { %p213_p0 = scmp.ne.s32.totalorder %s17_s13, %s212_s14  ;;  %p218_p2 = scmp.lt.s32.totalorder %s212_s14, %s212_s14 }
   0x7   :  { %p219_p3 = por %p218_p2, %p217_p1 }
   0x9   :  { %p220_p4 = pnand %p219_p3, %p213_p0 }
   0xb   :  { %223 = shalt.err (!%p220_p4)
}
   0xc   :  { %s271_s15 = smov 128   ;;  %s272_s16 = smov 8  }
   0xd   :  { %22 = dma.hbm_to_vmem [thread:$0]  %s325_s0, 256, %s17_s13, [#allocation4], %s271_s15, %s271_s15, %s272_s16  }
   0xe   :  { %s273_s19 = smov [#allocation6]  }
   0xf   :  { %s28_s20 = sshll.u32 %s273_s19, 4  ;;  %s29_s20 = int_to_ptr.vmem [resolvable:$true] %s28_s20 }
  0x10   :  { %s232_s21 = scalar_lea.vmem %s29_s20, 512  ;;  %p237_p6 = scmp.lt.s32.totalorder %s29_s20, %s29_s20 }
  0x11   :  { %p233_p5 = scmp.ne.s32.totalorder %s29_s20, %s232_s21  ;;  %p238_p7 = scmp.lt.s32.totalorder %s232_s21, %s232_s21 }
  0x13   :  { %p239_p8 = por %p238_p7, %p237_p6 }
  0x15   :  { %p240_p9 = pnand %p239_p8, %p233_p5 }
  0x17   :  { %243 = shalt.err (!%p240_p9)
}
  0x18   :  { %34 = dma.hbm_to_vmem [thread:$0]  %s326_s1, 512, %s29_s20, [#allocation7], %s271_s15, %s271_s15, %s272_s16  }
  0x19   :  { %264 = dma.done.wait [#allocation4], 256  }
  0x1a   :  { %265 = vsyncadd [#allocation4], 4294967040 }
  0x1b   :  { %266 = dma.done.wait [#allocation7], 512  }
  0x1c   :  { %267 = vsyncadd [#allocation7], 4294966784  ;;  %vm47_vm0 = vcmask 261120   ;;  %v274_v0 = vmov 0.0   ;;  %v57_v1 = vld [vmem:[#allocation6 + $0x18] sm:$0xff]  ;;  %v56_v2 = vld [vmem:[#allocation6 + $0x10] sm:$0xff] }
  0x1d   :  { %49 = vst.msk [vmem:[#allocation2 + $0x8] sm:$0xff] %vm47_vm0, %v274_v0  ;;  %48 = vst.msk [vmem:[#allocation2] sm:$0xff] %vm47_vm0, %v274_v0  ;;  %187 = vmatprep.subr.mxu0 %v57_v1  ;;  %v52_v3 = vld [vmem:[#allocation3] sm:$0xff]  ;;  %v55_v4 = vld [vmem:[#allocation6 + $0x8] sm:$0xff]  ;;  %s275_s24 = smov [#allocation8]  }
  0x1e   :  { %188 = vmatpush3.msra.mxu0 %v57_v1  ;;  %195 = vmatprep.mubr.msk.f32.mxu0 %vm47_vm0, %v52_v3  ;;  %v54_v5 = vld [vmem:[#allocation6] sm:$0xff]  ;;  %v53_v6 = vld [vmem:[#allocation3 + $0x8] sm:$0xff]  ;;  %s165_s25 = sshll.u32 %s275_s24, 4  ;;  %s166_s25 = int_to_ptr.vmem [resolvable:$true] %s165_s25 }
  0x1f   :  { %189 = vmatprep.subr.mxu0 %v56_v2  ;;  %v180_v13 = vld [vmem:[%s327_s2] ss:$0 sm:$0xff]  ;;  %s244_s26 = scalar_lea.vmem %s166_s25, 256  ;;  %p249_p11 = scmp.lt.s32.totalorder %s166_s25, %s166_s25 }
  0x20   :  { %190 = vmatpush3.msra.mxu0 %v56_v2  ;;  %p245_p10 = scmp.ne.s32.totalorder %s166_s25, %s244_s26  ;;  %p250_p12 = scmp.lt.s32.totalorder %s244_s26, %s244_s26 }
  0x21   :  { %191 = vmatprep.subr.mxu0 %v55_v4 }
  0x22   :  { %192 = vmatpush3.msra.mxu0 %v55_v4  ;;  %p251_p13 = por %p250_p12, %p249_p11 }
  0x23   :  { %193 = vmatprep.subr.mxu0 %v54_v5 }
  0x24   :  { %194 = vmatpush3.msra.mxu0 %v54_v5  ;;  %v51_v7 = vld [vmem:[#allocation2 + $0x8] sm:$0xff]  ;;  %v50_v9 = vld [vmem:[#allocation2] sm:$0xff]  ;;  %p252_p0 = pnand %p251_p13, %p245_p10 }
  0x25   :  { %196 = vmatmul.mubr.msk.f32.vlgmr.msra.gmra.mxu0 %vm47_vm0, %v53_v6 }
  0xe5   :  { %v197_v8 = vpop.f32.mrf.mxu0 }
  0xe6   :  { %v141_v10 = vadd.f32 %v197_v8, %v51_v7 }
  0xe7   :  { %v131_v11 = vpop.f32.mrf.mxu0 }
  0xe8   :  { %143 = vst.msk [vmem:[#allocation2 + $0x8] sm:$0xff] %vm47_vm0, %v141_v10  ;;  %v140_v12 = vadd.f32 %v131_v11, %v50_v9 }
  0xea   :  { %142 = vst.msk [vmem:[#allocation2] sm:$0xff] %vm47_vm0, %v140_v12 }
  0xef   :  { %v148_v14 = vld [vmem:[#allocation2 + $0x8] sm:$0xff] }
  0xf0   :  { %v157_v15 = vadd.f32 %v180_v13, %v148_v14 }
  0xf1   :  { %v147_v16 = vld [vmem:[#allocation2] sm:$0xff] }
  0xf2   :  { %v156_v17 = vadd.f32 %v180_v13, %v147_v16  ;;  %159 = vst.msk [vmem:[#allocation8 + $0x8] sm:$0xff] %vm47_vm0, %v157_v15 }
  0xf4   :  { %158 = vst.msk [vmem:[#allocation8] sm:$0xff] %vm47_vm0, %v156_v17 }
  0xf5   :  { %255 = shalt.err (!%p252_p0)
}
  0xf6   :  { %171 = dma.vmem_to_hbm [thread:$0]  %s166_s25, 256, %s328_s3, [#allocation5], %s271_s15, %s271_s15, %s272_s16  }
  0xf7   :  { %268 = dma.done.wait [#allocation5], 256  }
  0xf8   :  { %269 = vsyncadd [#allocation5], 4294967040 }
  0xf9   :  { %175 = vsyncpa [#allocation4], 1 }
  0xfa   :  { %176 = vsyncpa [#allocation7], 1 }
  0xfb   :  { %177 = vsyncpa [#allocation5], 1 }

</bundles_post_ra>
